<compile_context>
chip_gen: v5e
topology: v5e:2x2
jax: 0.10.0
libtpu: 0.0.40
codegen_flags: <defaults>
</compile_context>

<pallas_src>
import functools

import jax
import jax.numpy as jnp
from jax.experimental import pallas as pl
from jax.experimental.pallas import tpu as pltpu

_BN_EPS = 1e-5
_LANE = 128      # f32 lane width (last dim)
_SUBLANE = 8     # f32 sublane width (second-to-last dim)


def _round_up(x, m):
    return ((x + m - 1) // m) * m


def _fused_mlp_kernel(n_valid, num_hidden, *refs):
    """Whole-MLP forward in one kernel; activations never leave VMEM.

    refs = (x_ref,
            [wT_i, gamma_i, beta_i] * num_hidden,   # hidden biases folded away by BN
            wT_last, b_last,
            o_ref)
    """
    x_ref = refs[0]
    o_ref = refs[-1]
    p = refs[1:-1]

    h = x_ref[...]
    n_pad = h.shape[0]

    inv_n = jnp.float32(1.0 / n_valid)
    if n_pad != n_valid:
        # Mask padded batch rows out of the batch statistics.
        row_ids = jax.lax.broadcasted_iota(jnp.int32, (n_pad, 1), 0)
        row_mask = (row_ids < n_valid).astype(jnp.float32)
    else:
        row_mask = None

    idx = 0
    for _ in range(num_hidden):
        wT_ref, g_ref, be_ref = p[idx], p[idx + 1], p[idx + 2]
        idx += 3
        # Linear on the MXU, f32 accumulate.  Bias omitted: BatchNorm (train
        # mode) subtracts the per-column mean, so the bias cancels exactly.
        y = jnp.dot(h, wT_ref[...], preferred_element_type=jnp.float32)
        # One-pass masked batch statistics: var = E[y^2] - mean^2.
        ym = y if row_mask is None else y * row_mask
        mean = jnp.sum(ym, axis=0, keepdims=True) * inv_n
        ey2 = jnp.sum(ym * y, axis=0, keepdims=True) * inv_n
        var = jnp.maximum(ey2 - mean * mean, 0.0)
        # Fold normalize + affine into one per-element FMA, then ReLU (VPU).
        scale = g_ref[...] * jax.lax.rsqrt(var + _BN_EPS)   # (1, D) -- cheap
        shift = be_ref[...] - mean * scale                  # (1, D) -- cheap
        h = jnp.maximum(y * scale + shift, 0.0)

    wT_ref, b_ref = p[idx], p[idx + 1]
    o_ref[...] = (
        jnp.dot(h, wT_ref[...], preferred_element_type=jnp.float32) + b_ref[...]
    )


def init_mlp_params(key, num_layers, input_dim, hidden_dim, output_dim):
    """Deterministic parameters in PyTorch layout (w: (out, in))."""
    if num_layers < 1:
        raise ValueError("number of layers should be positive!")
    params = {"linears": [], "bns": []}
    if num_layers == 1:
        dims = [(input_dim, output_dim)]
    else:
        dims = [(input_dim, hidden_dim)]
        dims += [(hidden_dim, hidden_dim)] * (num_layers - 2)
        dims += [(hidden_dim, output_dim)]
    for din, dout in dims:
        key, kw, kb = jax.random.split(key, 3)
        bound = 1.0 / (din ** 0.5)
        w = jax.random.uniform(kw, (dout, din), jnp.float32, -bound, bound)
        b = jax.random.uniform(kb, (dout,), jnp.float32, -bound, bound)
        params["linears"].append((w, b))
    for _ in range(num_layers - 1):
        params["bns"].append(
            (jnp.ones((hidden_dim,), jnp.float32),
             jnp.zeros((hidden_dim,), jnp.float32))
        )
    return params


def prepare_mlp_params(params, num_layers):
    """Transpose + lane-pad parameters ONCE; reuse across forward calls.

    Hidden-layer Linear biases are intentionally not packed (BN cancels them).
    """
    num_hidden = num_layers - 1 if num_layers > 1 else 0
    flat = []
    for i in range(num_hidden):
        w, _b = params["linears"][i]
        g, be = params["bns"][i]
        dout, din = w.shape
        din_p, dout_p = _round_up(din, _LANE), _round_up(dout, _LANE)
        flat.append(jnp.zeros((din_p, dout_p), jnp.float32).at[:din, :dout].set(w.T))
        # Padded gamma/beta are 0 => padded feature columns stay exactly 0.
        flat.append(jnp.zeros((1, dout_p), jnp.float32).at[0, :dout].set(g))
        flat.append(jnp.zeros((1, dout_p), jnp.float32).at[0, :dout].set(be))
    w, b = params["linears"][-1]
    dout, din = w.shape
    din_p, dout_p = _round_up(din, _LANE), _round_up(dout, _LANE)
    flat.append(jnp.zeros((din_p, dout_p), jnp.float32).at[:din, :dout].set(w.T))
    flat.append(jnp.zeros((1, dout_p), jnp.float32).at[0, :dout].set(b))
    return tuple(flat), num_hidden, int(dout)


@functools.partial(jax.jit, static_argnames=("num_hidden", "output_dim"))
def _mlp_forward_impl(flat_params, x, *, num_hidden, output_dim):
    n, din = x.shape
    n_pad = _round_up(n, _SUBLANE)
    din_pad = _round_up(din, _LANE)
    x_pad = jnp.zeros((n_pad, din_pad), jnp.float32).at[:n, :din].set(x)

    dout_pad = flat_params[-2].shape[1]

    # Advisory cost estimate (padded-shape matmul flops + rsqrt count).
    flops = 2 * n_pad * flat_params[-2].shape[0] * flat_params[-2].shape[1]
    for i in range(num_hidden):
        wT = flat_params[3 * i]
        flops += 2 * n_pad * wT.shape[0] * wT.shape[1]
    bytes_accessed = 4 * (
        x_pad.size + sum(int(a.size) for a in flat_params) + n_pad * dout_pad
    )
    cost = pl.CostEstimate(
        flops=int(flops),
        transcendentals=int(num_hidden * dout_pad),
        bytes_accessed=int(bytes_accessed),
    )

    # VMEM budget: inputs/params/output + a few live [n_pad, max_width] tiles.
    max_w = max([x_pad.shape[1]] + [a.shape[1] for a in flat_params])
    need = bytes_accessed + 4 * 4 * n_pad * max_w
    vmem_limit = min(max(32 * 1024 * 1024, int(need * 2)), 64 * 1024 * 1024)

    vmem_spec = pl.BlockSpec(memory_space=pltpu.MemorySpace.VMEM)
    out_pad = pl.pallas_call(
        functools.partial(_fused_mlp_kernel, n, num_hidden),
        out_shape=jax.ShapeDtypeStruct((n_pad, dout_pad), jnp.float32),
        in_specs=[vmem_spec] * (1 + len(flat_params)),
        out_specs=vmem_spec,
        compiler_params=pltpu.CompilerParams(vmem_limit_bytes=vmem_limit),
        cost_estimate=cost,
    )(x_pad, *flat_params)
    return out_pad[:n, :output_dim]


def mlp_forward(prepared, x):
    flat_params, num_hidden, output_dim = prepared
    return _mlp_forward_impl(
        flat_params, x, num_hidden=num_hidden, output_dim=output_dim
    )


def _reference_forward(params, x, num_layers):
    """Pure-JAX reference mirroring the PyTorch module."""
    if num_layers == 1:
        w, b = params["linears"][0]
        return x @ w.T + b
    h = x
    for i in range(num_layers - 1):
        w, b = params["linears"][i]
        gamma, beta = params["bns"][i]
        y = h @ w.T + b
        mean = jnp.mean(y, axis=0, keepdims=True)
        var = jnp.mean((y - mean) ** 2, axis=0, keepdims=True)
        y = (y - mean) * jax.lax.rsqrt(var + _BN_EPS) * gamma + beta
        h = jnp.maximum(y, 0.0)
    w, b = params["linears"][-1]
    return h @ w.T + b


if __name__ == "__main__":
    num_layers = 3
    input_dim = 16
    hidden_dim = 32
    output_dim = 8
    batch = 8

    key = jax.random.PRNGKey(0)
    key, kx = jax.random.split(key)
    x = jax.random.normal(kx, (batch, input_dim), jnp.float32)

    params = init_mlp_params(key, num_layers, input_dim, hidden_dim, output_dim)
    prepared = prepare_mlp_params(params, num_layers)

    # Aligned batch (no row masking path).
    out = jax.block_until_ready(mlp_forward(prepared, x))
    ref = _reference_forward(params, x, num_layers)
    assert out.shape == (batch, output_dim)
    assert jnp.allclose(out, ref, atol=1e-4, rtol=1e-4)

    # Non-aligned batch exercises masked BN statistics over padded rows.
    x5 = x[:5]
    out5 = jax.block_until_ready(mlp_forward(prepared, x5))
    ref5 = _reference_forward(params, x5, num_layers)
    assert out5.shape == (5, output_dim)
    assert jnp.allclose(out5, ref5, atol=1e-4, rtol=1e-4)

    # num_layers == 1 path (pure linear, no BN).
    params1 = init_mlp_params(key, 1, input_dim, hidden_dim, output_dim)
    prepared1 = prepare_mlp_params(params1, 1)
    out1 = jax.block_until_ready(mlp_forward(prepared1, x))
    ref1 = _reference_forward(params1, x, 1)
    assert out1.shape == (batch, output_dim)
    assert jnp.allclose(out1, ref1, atol=1e-4, rtol=1e-4)

    print("KERNEL_OK")
</pallas_src>

<mosaic_0001>
module attributes {stable_mosaic.version = 11 : i64} {
  func.func @_fused_mlp_kernel(%arg0: memref<8x128xf32, #tpu.memory_space<vmem>>, %arg1: memref<128x128xf32, #tpu.memory_space<vmem>>, %arg2: memref<1x128xf32, #tpu.memory_space<vmem>>, %arg3: memref<1x128xf32, #tpu.memory_space<vmem>>, %arg4: memref<128x128xf32, #tpu.memory_space<vmem>>, %arg5: memref<1x128xf32, #tpu.memory_space<vmem>>, %arg6: memref<1x128xf32, #tpu.memory_space<vmem>>, %arg7: memref<128x128xf32, #tpu.memory_space<vmem>>, %arg8: memref<1x128xf32, #tpu.memory_space<vmem>>, %arg9: memref<8x128xf32, #tpu.memory_space<vmem>>) attributes {dimension_semantics = [], scalar_prefetch = 0 : i64, scratch_operands = 0 : i64, tpu.core_type = #tpu.core_type<tc>} {
    %c0 = arith.constant 0 : index
    %c0_0 = arith.constant 0 : index
    %0 = vector.load %arg0[%c0, %c0_0] : memref<8x128xf32, #tpu.memory_space<vmem>>, vector<8x128xf32>
    %c0_1 = arith.constant 0 : index
    %c0_2 = arith.constant 0 : index
    %1 = vector.load %arg1[%c0_1, %c0_2] : memref<128x128xf32, #tpu.memory_space<vmem>>, vector<128x128xf32>
    %cst = arith.constant dense<0.000000e+00> : vector<8x128xf32>
    %2 = tpu.matmul %0, %1, %cst {dimension_numbers = #tpu.dot_dimension_numbers<[1], [0], [0], [1], [0, 0, 1, 1], [], []>} : vector<8x128xf32>, vector<128x128xf32>, vector<8x128xf32> -> vector<8x128xf32>
    %cst_3 = arith.constant dense<0.000000e+00> : vector<128xf32>
    %3 = vector.multi_reduction <add>, %2, %cst_3 [0] : vector<8x128xf32> to vector<128xf32>
    %4 = vector.shape_cast %3 : vector<128xf32> to vector<1x128xf32>
    %cst_4 = arith.constant 1.250000e-01 : f32
    %5 = vector.broadcast %cst_4 : f32 to vector<1x128xf32>
    %6 = arith.mulf %4, %5 : vector<1x128xf32>
    %7 = arith.mulf %2, %2 : vector<8x128xf32>
    %cst_5 = arith.constant dense<0.000000e+00> : vector<128xf32>
    %8 = vector.multi_reduction <add>, %7, %cst_5 [0] : vector<8x128xf32> to vector<128xf32>
    %9 = vector.shape_cast %8 : vector<128xf32> to vector<1x128xf32>
    %cst_6 = arith.constant 1.250000e-01 : f32
    %10 = vector.broadcast %cst_6 : f32 to vector<1x128xf32>
    %11 = arith.mulf %9, %10 : vector<1x128xf32>
    %12 = arith.mulf %6, %6 : vector<1x128xf32>
    %13 = arith.subf %11, %12 : vector<1x128xf32>
    %cst_7 = arith.constant 0.000000e+00 : f32
    %14 = vector.broadcast %cst_7 : f32 to vector<1x128xf32>
    %15 = arith.maximumf %13, %14 : vector<1x128xf32>
    %c0_8 = arith.constant 0 : index
    %c0_9 = arith.constant 0 : index
    %16 = vector.load %arg2[%c0_8, %c0_9] : memref<1x128xf32, #tpu.memory_space<vmem>>, vector<1x128xf32>
    %cst_10 = arith.constant 9.99999974E-6 : f32
    %17 = vector.broadcast %cst_10 : f32 to vector<1x128xf32>
    %18 = arith.addf %15, %17 : vector<1x128xf32>
    %19 = math.rsqrt %18 : vector<1x128xf32>
    %20 = arith.mulf %16, %19 : vector<1x128xf32>
    %c0_11 = arith.constant 0 : index
    %c0_12 = arith.constant 0 : index
    %21 = vector.load %arg3[%c0_11, %c0_12] : memref<1x128xf32, #tpu.memory_space<vmem>>, vector<1x128xf32>
    %22 = arith.mulf %6, %20 : vector<1x128xf32>
    %23 = arith.subf %21, %22 : vector<1x128xf32>
    %24 = vector.broadcast %20 : vector<1x128xf32> to vector<8x128xf32>
    %25 = arith.mulf %2, %24 : vector<8x128xf32>
    %26 = vector.broadcast %23 : vector<1x128xf32> to vector<8x128xf32>
    %27 = arith.addf %25, %26 : vector<8x128xf32>
    %cst_13 = arith.constant 0.000000e+00 : f32
    %28 = vector.broadcast %cst_13 : f32 to vector<8x128xf32>
    %29 = arith.maximumf %27, %28 : vector<8x128xf32>
    %c0_14 = arith.constant 0 : index
    %c0_15 = arith.constant 0 : index
    %30 = vector.load %arg4[%c0_14, %c0_15] : memref<128x128xf32, #tpu.memory_space<vmem>>, vector<128x128xf32>
    %cst_16 = arith.constant dense<0.000000e+00> : vector<8x128xf32>
    %31 = tpu.matmul %29, %30, %cst_16 {dimension_numbers = #tpu.dot_dimension_numbers<[1], [0], [0], [1], [0, 0, 1, 1], [], []>} : vector<8x128xf32>, vector<128x128xf32>, vector<8x128xf32> -> vector<8x128xf32>
    %cst_17 = arith.constant dense<0.000000e+00> : vector<128xf32>
    %32 = vector.multi_reduction <add>, %31, %cst_17 [0] : vector<8x128xf32> to vector<128xf32>
    %33 = vector.shape_cast %32 : vector<128xf32> to vector<1x128xf32>
    %cst_18 = arith.constant 1.250000e-01 : f32
    %34 = vector.broadcast %cst_18 : f32 to vector<1x128xf32>
    %35 = arith.mulf %33, %34 : vector<1x128xf32>
    %36 = arith.mulf %31, %31 : vector<8x128xf32>
    %cst_19 = arith.constant dense<0.000000e+00> : vector<128xf32>
    %37 = vector.multi_reduction <add>, %36, %cst_19 [0] : vector<8x128xf32> to vector<128xf32>
    %38 = vector.shape_cast %37 : vector<128xf32> to vector<1x128xf32>
    %cst_20 = arith.constant 1.250000e-01 : f32
    %39 = vector.broadcast %cst_20 : f32 to vector<1x128xf32>
    %40 = arith.mulf %38, %39 : vector<1x128xf32>
    %41 = arith.mulf %35, %35 : vector<1x128xf32>
    %42 = arith.subf %40, %41 : vector<1x128xf32>
    %cst_21 = arith.constant 0.000000e+00 : f32
    %43 = vector.broadcast %cst_21 : f32 to vector<1x128xf32>
    %44 = arith.maximumf %42, %43 : vector<1x128xf32>
    %c0_22 = arith.constant 0 : index
    %c0_23 = arith.constant 0 : index
    %45 = vector.load %arg5[%c0_22, %c0_23] : memref<1x128xf32, #tpu.memory_space<vmem>>, vector<1x128xf32>
    %cst_24 = arith.constant 9.99999974E-6 : f32
    %46 = vector.broadcast %cst_24 : f32 to vector<1x128xf32>
    %47 = arith.addf %44, %46 : vector<1x128xf32>
    %48 = math.rsqrt %47 : vector<1x128xf32>
    %49 = arith.mulf %45, %48 : vector<1x128xf32>
    %c0_25 = arith.constant 0 : index
    %c0_26 = arith.constant 0 : index
    %50 = vector.load %arg6[%c0_25, %c0_26] : memref<1x128xf32, #tpu.memory_space<vmem>>, vector<1x128xf32>
    %51 = arith.mulf %35, %49 : vector<1x128xf32>
    %52 = arith.subf %50, %51 : vector<1x128xf32>
    %53 = vector.broadcast %49 : vector<1x128xf32> to vector<8x128xf32>
    %54 = arith.mulf %31, %53 : vector<8x128xf32>
    %55 = vector.broadcast %52 : vector<1x128xf32> to vector<8x128xf32>
    %56 = arith.addf %54, %55 : vector<8x128xf32>
    %cst_27 = arith.constant 0.000000e+00 : f32
    %57 = vector.broadcast %cst_27 : f32 to vector<8x128xf32>
    %58 = arith.maximumf %56, %57 : vector<8x128xf32>
    %c0_28 = arith.constant 0 : index
    %c0_29 = arith.constant 0 : index
    %59 = vector.load %arg7[%c0_28, %c0_29] : memref<128x128xf32, #tpu.memory_space<vmem>>, vector<128x128xf32>
    %cst_30 = arith.constant dense<0.000000e+00> : vector<8x128xf32>
    %60 = tpu.matmul %58, %59, %cst_30 {dimension_numbers = #tpu.dot_dimension_numbers<[1], [0], [0], [1], [0, 0, 1, 1], [], []>} : vector<8x128xf32>, vector<128x128xf32>, vector<8x128xf32> -> vector<8x128xf32>
    %c0_31 = arith.constant 0 : index
    %c0_32 = arith.constant 0 : index
    %61 = vector.load %arg8[%c0_31, %c0_32] : memref<1x128xf32, #tpu.memory_space<vmem>>, vector<1x128xf32>
    %62 = vector.broadcast %61 : vector<1x128xf32> to vector<8x128xf32>
    %63 = arith.addf %60, %62 : vector<8x128xf32>
    %c0_33 = arith.constant 0 : index
    %c0_34 = arith.constant 0 : index
    %64 = vector.load %arg9[%c0_33, %c0_34] : memref<8x128xf32, #tpu.memory_space<vmem>>, vector<8x128xf32>
    tpu.vector_store %arg9[%c0_33, %c0_34], %63 {strides = array<i32>} : memref<8x128xf32, #tpu.memory_space<vmem>>, vector<8x128xf32>,
    return
  }
}

</mosaic_0001>

<bundles_post_ra>
// kernel: _mlp_forward_impl.1
= control target key start
LH: loop header
LB: loop body
LE: loop exit
PB: predicated region body
PF: predicated region fallthrough
CT: control target
= control target key end

     0   :  { %14 = vsyncpa [#allocation3], 0  ;;  %s497_s0 = inlined_call_operand.vmem [shape: f32[8,128], index: 0, kind: input, shape index: {}]   ;;  %s498_s1 = inlined_call_operand.hbm [shape: f32[128,128], index: 1, kind: input, shape index: {}]   ;;  %s499_s2 = inlined_call_operand.vmem [shape: f32[1,128], index: 2, kind: input, shape index: {}]   ;;  %s500_s3 = inlined_call_operand.vmem [shape: f32[1,128], index: 3, kind: input, shape index: {}]   ;;  %s501_s4 = inlined_call_operand.hbm [shape: f32[128,128], index: 4, kind: input, shape index: {}]   ;;  %s502_s5 = inlined_call_operand.vmem [shape: f32[1,128], index: 5, kind: input, shape index: {}]   ;;  %s503_s6 = inlined_call_operand.vmem [shape: f32[1,128], index: 6, kind: input, shape index: {}]   ;;  %s504_s7 = inlined_call_operand.hbm [shape: f32[128,128], index: 7, kind: input, shape index: {}]   ;;  %s505_s8 = inlined_call_operand.vmem [shape: f32[1,128], index: 8, kind: input, shape index: {}]   ;;  %s506_s9 = inlined_call_operand.hbm [shape: f32[8,128], index: 9, kind: output, shape index: {}]  }
   0x1   :  { %15 = vsyncpa [#allocation6], 0 }
   0x2   :  { %16 = vsyncpa [#allocation4], 0  ;;  %s40_s11 = sshll.u32 %s501_s4, 4  ;;  %s411_s12 = smov [#allocation5]   ;;  %s41_s11 = int_to_ptr.hbm [resolvable:$true] %s40_s11 }
   0x3   :  { %s42_s13 = sshll.u32 %s411_s12, 4  ;;  %s23_s16 = sshll.u32 %s498_s1, 4  ;;  %s43_s13 = int_to_ptr.vmem [resolvable:$true] %s42_s13  ;;  %s24_s16 = int_to_ptr.hbm [resolvable:$true] %s23_s16 }
   0x4   :  { %s412_s17 = smov 128   ;;  %s413_s18 = smov 8  }
   0x5   :  { %48 = dma.hbm_to_vmem [thread:$0]  %s41_s11, 2048, %s43_s13, [#allocation6], %s412_s17, %s412_s17, %s413_s18  }
   0x6   :  { %s414_s19 = smov [#allocation2]   ;;  %s57_s23 = sshll.u32 %s504_s7, 4  ;;  %s58_s23 = int_to_ptr.hbm [resolvable:$true] %s57_s23 }
   0x7   :  { %s25_s20 = sshll.u32 %s414_s19, 4  ;;  %s415_s4 = smov [#allocation7]   ;;  %s26_s20 = int_to_ptr.vmem [resolvable:$true] %s25_s20 }
   0x8   :  { %31 = dma.hbm_to_vmem [thread:$0]  %s24_s16, 2048, %s26_s20, [#allocation3], %s412_s17, %s412_s17, %s413_s18  }
   0x9   :  { %s59_s24 = sshll.u32 %s415_s4, 4  ;;  %s60_s24 = int_to_ptr.vmem [resolvable:$true] %s59_s24 }
   0xa   :  { %65 = dma.hbm_to_vmem [thread:$0]  %s58_s23, 2048, %s60_s24, [#allocation6], %s412_s17, %s412_s17, %s413_s18  }
   0xb   :  { %405 = dma.done.wait [#allocation3], 2048  }
   0xc   :  { %406 = vsyncadd [#allocation3], 4294965248 }
   0xd   :  { %407 = dma.done.wait [#allocation6], 4096  }
   0xe   :  { %408 = vsyncadd [#allocation6], 4294963200  ;;  %v96_v0 = vld [vmem:[#allocation2 + $0x78] sm:$0xff]  ;;  %v95_v1 = vld [vmem:[#allocation2 + $0x70] sm:$0xff]  ;;  %s287_s14 = sshll.u32 %s506_s9, 4  ;;  %s288_s14 = int_to_ptr.hbm [resolvable:$true] %s287_s14 }
   0xf   :  { %97 = vmatpush.msra.mxu0 %v96_v0  ;;  %v94_v2 = vld [vmem:[#allocation2 + $0x68] sm:$0xff]  ;;  %v93_v3 = vld [vmem:[#allocation2 + $0x60] sm:$0xff]  ;;  %v92_v4 = vld [vmem:[#allocation2 + $0x58] sm:$0xff] }
  0x10   :  { %v91_v5 = vld [vmem:[#allocation2 + $0x50] sm:$0xff]  ;;  %v90_v6 = vld [vmem:[#allocation2 + $0x48] sm:$0xff]  ;;  %v89_v7 = vld [vmem:[#allocation2 + $0x40] sm:$0xff] }
  0x11   :  { %98 = vmatpush.msra.mxu0 %v95_v1  ;;  %v88_v8 = vld [vmem:[#allocation2 + $0x38] sm:$0xff]  ;;  %v87_v9 = vld [vmem:[#allocation2 + $0x30] sm:$0xff]  ;;  %v86_v10 = vld [vmem:[#allocation2 + $0x28] sm:$0xff] }
  0x12   :  { %v85_v11 = vld [vmem:[#allocation2 + $0x20] sm:$0xff]  ;;  %v84_v12 = vld [vmem:[#allocation2 + $0x18] sm:$0xff]  ;;  %v83_v13 = vld [vmem:[#allocation2 + $0x10] sm:$0xff] }
  0x13   :  { %99 = vmatpush.msra.mxu0 %v94_v2  ;;  %v82_v14 = vld [vmem:[#allocation2 + $0x8] sm:$0xff]  ;;  %v81_v15 = vld [vmem:[#allocation2] sm:$0xff]  ;;  %v175_v17 = vld [vmem:[#allocation5 + $0x78] sm:$0xff] }
  0x14   :  { %v80_v16 = vld [vmem:[%s497_s0] sm:$0xff]  ;;  %176 = vmatpush.msra.mxu1 %v175_v17  ;;  %v174_v18 = vld [vmem:[#allocation5 + $0x70] sm:$0xff]  ;;  %v173_v19 = vld [vmem:[#allocation5 + $0x68] sm:$0xff] }
  0x15   :  { %100 = vmatpush.msra.mxu0 %v93_v3  ;;  %v172_v20 = vld [vmem:[#allocation5 + $0x60] sm:$0xff]  ;;  %v171_v21 = vld [vmem:[#allocation5 + $0x58] sm:$0xff]  ;;  %v170_v22 = vld [vmem:[#allocation5 + $0x50] sm:$0xff] }
  0x16   :  { %177 = vmatpush.msra.mxu1 %v174_v18  ;;  %v169_v26 = vld [vmem:[#allocation5 + $0x48] sm:$0xff]  ;;  %v168_v29 = vld [vmem:[#allocation5 + $0x40] sm:$0xff]  ;;  %v167_v32 = vld [vmem:[#allocation5 + $0x38] sm:$0xff] }
  0x17   :  { %101 = vmatpush.msra.mxu0 %v92_v4  ;;  %v166_v35 = vld [vmem:[#allocation5 + $0x30] sm:$0xff]  ;;  %v165_v38 = vld [vmem:[#allocation5 + $0x28] sm:$0xff]  ;;  %v164_v41 = vld [vmem:[#allocation5 + $0x20] sm:$0xff] }
  0x18   :  { %178 = vmatpush.msra.mxu1 %v173_v19  ;;  %v163_v44 = vld [vmem:[#allocation5 + $0x18] sm:$0xff]  ;;  %v162_v45 = vld [vmem:[#allocation5 + $0x10] sm:$0xff]  ;;  %v161_v48 = vld [vmem:[#allocation5 + $0x8] sm:$0xff] }
  0x19   :  { %102 = vmatpush.msra.mxu0 %v91_v5  ;;  %v160_v50 = vld [vmem:[#allocation5] sm:$0xff] }
  0x1a   :  { %179 = vmatpush.msra.mxu1 %v172_v20  ;;  %v135_v58 = vld [vmem:[%s499_s2] sm:$0x1] }
  0x1b   :  { %103 = vmatpush.msra.mxu0 %v90_v6  ;;  %v148_v62 = vld [vmem:[%s500_s3] sm:$0x1]  ;;  %v254_v6 = vld [vmem:[#allocation7 + $0x78] sm:$0xff] }
  0x1c   :  { %180 = vmatpush.msra.mxu1 %v171_v21  ;;  %259 = vmatpush.msra.mxu2 %v254_v6  ;;  %v247_v18 = vld [vmem:[#allocation7 + $0x40] sm:$0xff]  ;;  %v246_v21 = vld [vmem:[#allocation7 + $0x38] sm:$0xff] }
  0x1d   :  { %104 = vmatpush.msra.mxu0 %v89_v7  ;;  %v253_v7 = vld [vmem:[#allocation7 + $0x70] sm:$0xff] }
  0x1e   :  { %181 = vmatpush.msra.mxu1 %v170_v22  ;;  %260 = vmatpush.msra.mxu2 %v253_v7 }
  0x1f   :  { %105 = vmatpush.msra.mxu0 %v88_v8  ;;  %v252_v8 = vld [vmem:[#allocation7 + $0x68] sm:$0xff] }
  0x20   :  { %182 = vmatpush.msra.mxu1 %v169_v26  ;;  %261 = vmatpush.msra.mxu2 %v252_v8 }
  0x21   :  { %106 = vmatpush.msra.mxu0 %v87_v9  ;;  %v251_v9 = vld [vmem:[#allocation7 + $0x60] sm:$0xff] }
  0x22   :  { %183 = vmatpush.msra.mxu1 %v168_v29  ;;  %262 = vmatpush.msra.mxu2 %v251_v9 }
  0x23   :  { %107 = vmatpush.msra.mxu0 %v86_v10  ;;  %v250_v10 = vld [vmem:[#allocation7 + $0x58] sm:$0xff] }
  0x24   :  { %184 = vmatpush.msra.mxu1 %v167_v32  ;;  %263 = vmatpush.msra.mxu2 %v250_v10 }
  0x25   :  { %108 = vmatpush.msra.mxu0 %v85_v11  ;;  %v249_v11 = vld [vmem:[#allocation7 + $0x50] sm:$0xff] }
  0x26   :  { %185 = vmatpush.msra.mxu1 %v166_v35  ;;  %264 = vmatpush.msra.mxu2 %v249_v11 }
  0x27   :  { %109 = vmatpush.msra.mxu0 %v84_v12 }
  0x28   :  { %186 = vmatpush.msra.mxu1 %v165_v38 }
  0x29   :  { %110 = vmatpush.msra.mxu0 %v83_v13 }
  0x2a   :  { %187 = vmatpush.msra.mxu1 %v164_v41 }
  0x2b   :  { %111 = vmatpush.msra.mxu0 %v82_v14 }
  0x2c   :  { %188 = vmatpush.msra.mxu1 %v163_v44 }
  0x2d   :  { %112 = vmatpush.msra.mxu0 %v81_v15  ;;  %v248_v15 = vld [vmem:[#allocation7 + $0x48] sm:$0xff] }
  0x2e   :  { %113 = vmatmul.f32.vlgmr.msra.gmra.mxu0 %v80_v16  ;;  %189 = vmatpush.msra.mxu1 %v162_v45 }
  0x2f   :  { %265 = vmatpush.msra.mxu2 %v248_v15 }
  0x30   :  { %190 = vmatpush.msra.mxu1 %v161_v48 }
  0x31   :  { %266 = vmatpush.msra.mxu2 %v247_v18 }
  0x32   :  { %191 = vmatpush.msra.mxu1 %v160_v50 }
  0x33   :  { %267 = vmatpush.msra.mxu2 %v246_v21 }
  0xab   :  { %v114_v23 = vpop.f32.mrf.mxu0 }
  0xac   :  { %v117_v24 = vrot.slane %v114_v23, 4  ;;  %v124_v25 = vmul.f32 %v114_v23, %v114_v23 }
  0xae   :  { %v118_v27 = vadd.f32 %v117_v24, %v114_v23  ;;  %v125_v28 = vrot.slane %v124_v25, 4  ;;  %v245_v24 = vld [vmem:[#allocation7 + $0x30] sm:$0xff] }
  0xaf   :  { %268 = vmatpush.msra.mxu2 %v245_v24 }
  0xb0   :  { %v119_v30 = vrot.slane %v118_v27, 2  ;;  %v126_v31 = vadd.f32 %v125_v28, %v124_v25 }
  0xb2   :  { %v120_v33 = vadd.f32 %v119_v30, %v118_v27  ;;  %v127_v34 = vrot.slane %v126_v31, 2  ;;  %v244_v27 = vld [vmem:[#allocation7 + $0x28] sm:$0xff]  ;;  %v243_v30 = vld [vmem:[#allocation7 + $0x20] sm:$0xff] }
  0xb3   :  { %269 = vmatpush.msra.mxu2 %v244_v27 }
  0xb4   :  { %v121_v36 = vrot.slane %v120_v33, 1  ;;  %v128_v37 = vadd.f32 %v127_v34, %v126_v31  ;;  %v241_v34 = vld [vmem:[#allocation7 + $0x10] sm:$0xff] }
  0xb5   :  { %270 = vmatpush.msra.mxu2 %v243_v30 }
  0xb6   :  { %v122_v39 = vadd.f32 %v121_v36, %v120_v33  ;;  %v129_v40 = vrot.slane %v128_v37, 1  ;;  %v242_v33 = vld [vmem:[#allocation7 + $0x18] sm:$0xff] }
  0xb7   :  { %271 = vmatpush.msra.mxu2 %v242_v33 }
  0xb8   :  { %v123_v42 = vmul.f32 0.125, %v122_v39  ;;  %v130_v43 = vadd.f32 %v129_v40, %v128_v37  ;;  %v240_v37 = vld [vmem:[#allocation7 + $0x8] sm:$0xff]  ;;  %v239_v39 = vld [vmem:[#allocation7] sm:$0xff] }
  0xb9   :  { %272 = vmatpush.msra.mxu2 %v241_v34 }
  0xba   :  { %v131_v46 = vmul.f32 0.125, %v130_v43  ;;  %v132_v47 = vmul.f32 %v123_v42, %v123_v42 }
  0xbb   :  { %273 = vmatpush.msra.mxu2 %v240_v37 }
  0xbc   :  { %v133_v49 = vsub.f32 %v131_v46, %v132_v47  ;;  %v214_v47 = vld [vmem:[%s502_s5] sm:$0x1]  ;;  %s416_s5 = smov [#allocation8]  }
  0xbd   :  { %274 = vmatpush.msra.mxu2 %v239_v39  ;;  %s285_s11 = sshll.u32 %s416_s5, 4  ;;  %s286_s11 = int_to_ptr.vmem [resolvable:$true] %s285_s11 }
  0xbe   :  { %v134_v51 = vmax.f32 %v133_v49, 0.0 }
  0xc0   :  { %v136_v52 = vadd.f32 1e-05, %v134_v51  ;;  %v227_v51 = vld [vmem:[%s503_s6] sm:$0x1] }
  0xc2   :  { %305 = vrsqrt.f32 %v136_v52  ;;  %vm143_vm1 = vweird.f32 %v136_v52 }
  0xc8   :  { %v306_v53 = vpop.eup %305 }
  0xc9   :  { %v138_v54 = vmul.f32 %v306_v53, %v136_v52  ;;  %vm144_vm0 = vweird.f32 %v306_v53 }
  0xca   :  { %vm145_vm2 = vmor %vm143_vm1, %vm144_vm0 }
  0xcb   :  { %v139_v55 = vmul.f32 %v306_v53, %v138_v54 }
  0xcd   :  { %v140_v56 = vmul.f32 0.5, %v139_v55 }
  0xcf   :  { %v141_v57 = vsub.f32 1.5, %v140_v56 }
  0xd1   :  { %v142_v59 = vmul.f32 %v306_v53, %v141_v57 }
  0xd3   :  { %v146_v60 = vsel %vm145_vm2, %v306_v53, %v142_v59  ;;  %v304_v59 = vld [vmem:[%s505_s8] ss:$0 sm:$0xff] }
  0xd4   :  { %v147_v61 = vmul.f32 %v146_v60, %v135_v58 }
  0xd6   :  { %v152_v63 = vperm.slane %v147_v61, 0  ;;  %v149_v0 = vmul.f32 %v147_v61, %v123_v42 }
  0xd8   :  { %v150_v1 = vsub.f32 %v148_v62, %v149_v0  ;;  %v154_v2 = vmul.f32 %v152_v63, %v114_v23 }
  0xda   :  { %v156_v3 = vperm.slane %v150_v1, 0 }
  0xdc   :  { %v158_v4 = vadd.f32 %v156_v3, %v154_v2 }
  0xde   :  { %v159_v5 = vmax.f32 %v158_v4, 0.0 }
  0xe0   :  { %192 = vmatmul.f32.vlgmr.msra.gmra.mxu1 %v159_v5 }
 0x15d   :  { %v193_v12 = vpop.f32.mrf.mxu1 }
 0x15e   :  { %v196_v13 = vrot.slane %v193_v12, 4  ;;  %v203_v14 = vmul.f32 %v193_v12, %v193_v12 }
 0x160   :  { %v197_v16 = vadd.f32 %v196_v13, %v193_v12  ;;  %v204_v17 = vrot.slane %v203_v14, 4 }
 0x162   :  { %v198_v19 = vrot.slane %v197_v16, 2  ;;  %v205_v20 = vadd.f32 %v204_v17, %v203_v14 }
 0x164   :  { %v199_v22 = vadd.f32 %v198_v19, %v197_v16  ;;  %v206_v23 = vrot.slane %v205_v20, 2 }
 0x166   :  { %v200_v25 = vrot.slane %v199_v22, 1  ;;  %v207_v26 = vadd.f32 %v206_v23, %v205_v20 }
 0x168   :  { %v201_v28 = vadd.f32 %v200_v25, %v199_v22  ;;  %v208_v29 = vrot.slane %v207_v26, 1 }
 0x16a   :  { %v202_v31 = vmul.f32 0.125, %v201_v28  ;;  %v209_v32 = vadd.f32 %v208_v29, %v207_v26 }
 0x16c   :  { %v210_v35 = vmul.f32 0.125, %v209_v32  ;;  %v211_v36 = vmul.f32 %v202_v31, %v202_v31 }
 0x16e   :  { %v212_v38 = vsub.f32 %v210_v35, %v211_v36 }
 0x170   :  { %v213_v40 = vmax.f32 %v212_v38, 0.0 }
 0x172   :  { %v215_v41 = vadd.f32 1e-05, %v213_v40 }
 0x174   :  { %307 = vrsqrt.f32 %v215_v41  ;;  %vm222_vm4 = vweird.f32 %v215_v41 }
 0x17a   :  { %v308_v42 = vpop.eup %307 }
 0x17b   :  { %v217_v43 = vmul.f32 %v308_v42, %v215_v41  ;;  %vm223_vm3 = vweird.f32 %v308_v42 }
 0x17c   :  { %vm224_vm5 = vmor %vm222_vm4, %vm223_vm3 }
 0x17d   :  { %v218_v44 = vmul.f32 %v308_v42, %v217_v43 }
 0x17f   :  { %v219_v45 = vmul.f32 0.5, %v218_v44 }
 0x181   :  { %v220_v46 = vsub.f32 1.5, %v219_v45 }
 0x183   :  { %v221_v48 = vmul.f32 %v308_v42, %v220_v46 }
 0x185   :  { %v225_v49 = vsel %vm224_vm5, %v308_v42, %v221_v48 }
 0x186   :  { %v226_v50 = vmul.f32 %v225_v49, %v214_v47 }
 0x188   :  { %v231_v52 = vperm.slane %v226_v50, 0  ;;  %v228_v53 = vmul.f32 %v226_v50, %v202_v31 }
 0x18a   :  { %v229_v54 = vsub.f32 %v227_v51, %v228_v53  ;;  %v233_v55 = vmul.f32 %v231_v52, %v193_v12 }
 0x18c   :  { %v235_v56 = vperm.slane %v229_v54, 0 }
 0x18e   :  { %v237_v57 = vadd.f32 %v235_v56, %v233_v55 }
 0x190   :  { %v238_v58 = vmax.f32 %v237_v57, 0.0 }
 0x192   :  { %275 = vmatmul.f32.vlgmr.msra.gmra.mxu2 %v238_v58 }
 0x215   :  { %v276_v60 = vpop.f32.mrf.mxu2 }
 0x216   :  { %v277_v61 = vadd.f32 %v304_v59, %v276_v60 }
 0x218   :  { %279 = vst [vmem:[#allocation8] sm:$0xff] %v277_v61 }
 0x219   :  { %290 = dma.vmem_to_hbm [thread:$0]  %s286_s11, 128, %s288_s14, [#allocation4]  }
 0x21a   :  { %409 = dma.done.wait [#allocation4], 128  }
 0x21b   :  { %410 = vsyncadd [#allocation4], 4294967168 }
 0x21c   :  { %295 = vsyncpa [#allocation3], 1 }
 0x21d   :  { %296 = vsyncpa [#allocation6], 1 }
 0x21e   :  { %297 = vsyncpa [#allocation4], 1 }

</bundles_post_ra>
